<compile_context>
chip_gen: v7x
topology: tpu7x:2x2x1
jax: 0.10.0
libtpu: 0.0.40
codegen_flags: <defaults>
</compile_context>

<pallas_src>
import math

import jax
import jax.numpy as jnp
from jax.experimental import pallas as pl
from jax.experimental.pallas import tpu as pltpu


def _attn_kernel(q_ref, k_ref, v_ref, o_ref, acc_ref):
    """One (batch-block, key-block) grid step.

    q_ref:   (BB, Q,  D)  VMEM tile (input dtype)
    k_ref:   (BB, TK, D)  VMEM tile (input dtype)
    v_ref:   (BB, TK, V)  VMEM tile (input dtype)
    o_ref:   (BB, Q,  V)  VMEM tile (output dtype)
    acc_ref: (BB, Q,  V)  f32 accumulator, resident across the K grid axis
    """
    kb = pl.program_id(1)

    @pl.when(kb == 0)
    def _():
        acc_ref[...] = jnp.zeros_like(acc_ref)

    d = q_ref.shape[-1]
    # Fold 1/sqrt(d) into q: Q*D elements touched instead of Q*K.
    scale = jnp.asarray(1.0 / math.sqrt(d), dtype=q_ref.dtype)
    q = q_ref[...] * scale          # stays in the input dtype (bf16 stays bf16)
    k = k_ref[...]
    v = v_ref[...]

    # scores (BB, Q, TK): contract the shared D axis directly — no k.T is
    # materialized; MXU accumulates in f32.
    s = jnp.einsum("bqd,bkd->bqk", q, k, preferred_element_type=jnp.float32)

    # softmax over dim=1 of the (B, Q, K) score tensor == the Q axis.  Q is
    # whole inside every grid step, so each key column normalizes locally.
    m = jnp.max(s, axis=1, keepdims=True)
    e = jnp.exp(s - m)
    denom = jnp.sum(e, axis=1, keepdims=True)
    # EUP approximate reciprocal + one Newton-Raphson step on the tiny
    # (BB, 1, TK) denominator: keeps the divide off the VALU, near-exact result.
    r = pl.reciprocal(denom, approx=True)
    r = r * (2.0 - denom * r)
    w = e * r

    # Partial (BB, Q, V) contribution of this key block; accumulate in f32.
    acc_ref[...] += jnp.einsum(
        "bqk,bkv->bqv", w.astype(v.dtype), v, preferred_element_type=jnp.float32
    )

    @pl.when(kb == pl.num_programs(1) - 1)
    def _():
        o_ref[...] = acc_ref[...].astype(o_ref.dtype)


def _pick_key_block(K, preferred=512, multiple=8):
    """Largest divisor of K that is a multiple of 8 and <= `preferred`, else K."""
    if K <= preferred:
        return K
    t = (preferred // multiple) * multiple
    while t >= multiple:
        if K % t == 0:
            return t
        t -= multiple
    return K


def _pick_batch_block(B, max_bb=8):
    """Largest divisor of B (capped) that still leaves >= 2 parallel grid steps."""
    if B < 2:
        return B
    best = 1
    for bb in range(1, min(B // 2, max_bb) + 1):
        if B % bb == 0:
            best = bb
    return best


def dot_product_attention(queries, keys, values, *, block_b=None, block_k=None):
    """Pallas wrapper. queries (B,Q,D), keys (B,K,D), values (B,K,V) -> (B,Q,V)."""
    B, Q, D = queries.shape
    Bk, K, Dk = keys.shape
    Bv, Kv, V = values.shape
    assert B == Bk == Bv and D == Dk and K == Kv

    BB = block_b if block_b is not None else _pick_batch_block(B)
    TK = block_k if block_k is not None else _pick_key_block(K)
    assert B % BB == 0, "batch block must divide B"
    assert K % TK == 0, "key block must divide K"
    assert TK == K or TK % 8 == 0, "key block must be 8-aligned or the full K"

    # Rough per-step VMEM budget: double-buffered inputs/output + f32
    # accumulator + f32 scores tile.  Cap well under v7x's 64 MiB per-TC VMEM.
    in_bytes = queries.dtype.itemsize
    est = (
        2 * BB * (Q * D + TK * D + TK * V) * in_bytes
        + 2 * BB * Q * V * in_bytes
        + BB * Q * V * 4
        + BB * Q * TK * 4
    )
    vmem_limit = int(min(max(2 * est, 16 * 1024 * 1024), 48 * 1024 * 1024))

    grid = (B // BB, K // TK)
    return pl.pallas_call(
        _attn_kernel,
        out_shape=jax.ShapeDtypeStruct((B, Q, V), queries.dtype),
        grid=grid,
        in_specs=[
            pl.BlockSpec((BB, Q, D), lambda b, kb: (b, 0, 0)),    # queries: reused per K block
            pl.BlockSpec((BB, TK, D), lambda b, kb: (b, kb, 0)),  # keys:   K-tiled
            pl.BlockSpec((BB, TK, V), lambda b, kb: (b, kb, 0)),  # values: K-tiled
        ],
        out_specs=pl.BlockSpec((BB, Q, V), lambda b, kb: (b, 0, 0)),
        scratch_shapes=[pltpu.VMEM((BB, Q, V), jnp.float32)],
        compiler_params=pltpu.CompilerParams(
            dimension_semantics=("parallel", "arbitrary"),
            vmem_limit_bytes=vmem_limit,
        ),
    )(queries, keys, values)


def _reference(queries, keys, values):
    d = queries.shape[-1]
    scores = jnp.einsum("bqd,bkd->bqk", queries, keys) / math.sqrt(d)
    weights = jax.nn.softmax(scores, axis=1)  # dim=1, exactly as the PyTorch code
    return jnp.einsum("bqk,bkv->bqv", weights, values)


if __name__ == "__main__":
    # Small shapes consistent with the module's batched attention forward.
    B, Q, K, D, V = 4, 8, 64, 16, 16

    key = jax.random.PRNGKey(0)
    kq, kk = jax.random.split(key)
    queries = jax.random.normal(kq, (B, Q, D), dtype=jnp.float32)
    keys = jax.random.normal(kk, (B, K, D), dtype=jnp.float32)
    # values = arange(...).reshape(...) analogous to the PyTorch script setup
    values = (
        jnp.arange(B * K * V, dtype=jnp.float32).reshape(B, K, V) / float(K * V)
    )

    # Force the batch-blocked / K-tiled path even at toy shapes:
    # grid = (B//2, K//16) = (2, 4): 2 parallel batch steps, 4-step K reduction.
    out = dot_product_attention(queries, keys, values, block_b=2, block_k=16)
    out = jax.block_until_ready(out)

    ref = _reference(queries, keys, values)
    assert out.shape == (B, Q, V)
    assert jnp.allclose(out, ref, atol=1e-3, rtol=1e-3), "mismatch vs reference"

    print("KERNEL_OK")
</pallas_src>

<mosaic_0001>
module attributes {stable_mosaic.version = 11 : i64} {
  func.func @_attn_kernel(%arg0: i32, %arg1: i32, %arg2: memref<2x8x16xf32, #tpu.memory_space<vmem>>, %arg3: memref<2x16x16xf32, #tpu.memory_space<vmem>>, %arg4: memref<2x16x16xf32, #tpu.memory_space<vmem>>, %arg5: memref<2x8x16xf32, #tpu.memory_space<vmem>>, %arg6: memref<2x8x16xf32, #tpu.memory_space<vmem>>) attributes {dimension_semantics = [#tpu.dimension_semantics<parallel>, #tpu.dimension_semantics<arbitrary>], iteration_bounds = array<i64: 2, 4>, scalar_prefetch = 0 : i64, scratch_operands = 1 : i64, tpu.core_type = #tpu.core_type<tc>, window_params = [{transform_indices = @transform_0, window_bounds = array<i64: 2, 8, 16>}, {transform_indices = @transform_1, window_bounds = array<i64: 2, 16, 16>}, {transform_indices = @transform_2, window_bounds = array<i64: 2, 16, 16>}, {transform_indices = @transform_3, window_bounds = array<i64: 2, 8, 16>}]} {
    %c0_i32 = arith.constant 0 : i32
    %0 = arith.cmpi eq, %arg1, %c0_i32 : i32
    %1 = arith.extui %0 : i1 to i32
    %c0_i32_0 = arith.constant 0 : i32
    %2 = arith.cmpi ne, %1, %c0_i32_0 : i32
    scf.if %2 {
      %cst_21 = arith.constant 0.000000e+00 : f32
      %30 = vector.broadcast %cst_21 : f32 to vector<2x8x16xf32>
      %c0_22 = arith.constant 0 : index
      %c0_23 = arith.constant 0 : index
      %c0_24 = arith.constant 0 : index
      %31 = vector.load %arg6[%c0_22, %c0_23, %c0_24] : memref<2x8x16xf32, #tpu.memory_space<vmem>>, vector<2x8x16xf32>
      tpu.vector_store %arg6[%c0_22, %c0_23, %c0_24], %30 {strides = array<i32>} : memref<2x8x16xf32, #tpu.memory_space<vmem>>, vector<2x8x16xf32>,
    } else {
    }
    %c0 = arith.constant 0 : index
    %c0_1 = arith.constant 0 : index
    %c0_2 = arith.constant 0 : index
    %3 = vector.load %arg2[%c0, %c0_1, %c0_2] : memref<2x8x16xf32, #tpu.memory_space<vmem>>, vector<2x8x16xf32>
    %cst = arith.constant 2.500000e-01 : f32
    %4 = vector.broadcast %cst : f32 to vector<2x8x16xf32>
    %5 = arith.mulf %3, %4 : vector<2x8x16xf32>
    %c0_3 = arith.constant 0 : index
    %c0_4 = arith.constant 0 : index
    %c0_5 = arith.constant 0 : index
    %6 = vector.load %arg3[%c0_3, %c0_4, %c0_5] : memref<2x16x16xf32, #tpu.memory_space<vmem>>, vector<2x16x16xf32>
    %c0_6 = arith.constant 0 : index
    %c0_7 = arith.constant 0 : index
    %c0_8 = arith.constant 0 : index
    %7 = vector.load %arg4[%c0_6, %c0_7, %c0_8] : memref<2x16x16xf32, #tpu.memory_space<vmem>>, vector<2x16x16xf32>
    "tpu.trace_start"() <{level = 10 : i32, message = "bqd,bkd->bqk"}> : () -> ()
    %cst_9 = arith.constant dense<0.000000e+00> : vector<2x8x16xf32>
    %8 = tpu.matmul %5, %6, %cst_9 {dimension_numbers = #tpu.dot_dimension_numbers<[2], [2], [1], [1], [0, 0, 0, 1, 1, 1], [0], [0]>} : vector<2x8x16xf32>, vector<2x16x16xf32>, vector<2x8x16xf32> -> vector<2x8x16xf32>
    "tpu.trace_stop"() : () -> ()
    %cst_10 = arith.constant dense<0xFF800000> : vector<2x16xf32>
    %9 = vector.multi_reduction <maximumf>, %8, %cst_10 [1] : vector<2x8x16xf32> to vector<2x16xf32>
    %10 = vector.shape_cast %9 : vector<2x16xf32> to vector<2x1x16xf32>
    %11 = vector.broadcast %10 : vector<2x1x16xf32> to vector<2x8x16xf32>
    %12 = arith.subf %8, %11 : vector<2x8x16xf32>
    %13 = math.exp %12 : vector<2x8x16xf32>
    %cst_11 = arith.constant dense<0.000000e+00> : vector<2x16xf32>
    %14 = vector.multi_reduction <add>, %13, %cst_11 [1] : vector<2x8x16xf32> to vector<2x16xf32>
    %15 = vector.shape_cast %14 : vector<2x16xf32> to vector<2x1x16xf32>
    %16 = tpu.reciprocal %15 {approx = true} : vector<2x1x16xf32> -> vector<2x1x16xf32>
    %17 = arith.mulf %15, %16 : vector<2x1x16xf32>
    %cst_12 = arith.constant 2.000000e+00 : f32
    %18 = vector.broadcast %cst_12 : f32 to vector<2x1x16xf32>
    %19 = arith.subf %18, %17 : vector<2x1x16xf32>
    %20 = arith.mulf %16, %19 : vector<2x1x16xf32>
    %21 = vector.broadcast %20 : vector<2x1x16xf32> to vector<2x8x16xf32>
    %22 = arith.mulf %13, %21 : vector<2x8x16xf32>
    %c0_13 = arith.constant 0 : index
    %c0_14 = arith.constant 0 : index
    %c0_15 = arith.constant 0 : index
    %23 = vector.load %arg6[%c0_13, %c0_14, %c0_15] : memref<2x8x16xf32, #tpu.memory_space<vmem>>, vector<2x8x16xf32>
    "tpu.trace_start"() <{level = 10 : i32, message = "bqk,bkv->bqv"}> : () -> ()
    %cst_16 = arith.constant dense<0.000000e+00> : vector<2x8x16xf32>
    %24 = tpu.matmul %22, %7, %cst_16 {dimension_numbers = #tpu.dot_dimension_numbers<[2], [1], [1], [2], [0, 0, 0, 1, 1, 2], [0], [0]>} : vector<2x8x16xf32>, vector<2x16x16xf32>, vector<2x8x16xf32> -> vector<2x8x16xf32>
    "tpu.trace_stop"() : () -> ()
    %25 = arith.addf %23, %24 : vector<2x8x16xf32>
    %c0_17 = arith.constant 0 : index
    %c0_18 = arith.constant 0 : index
    %c0_19 = arith.constant 0 : index
    %26 = vector.load %arg6[%c0_17, %c0_18, %c0_19] : memref<2x8x16xf32, #tpu.memory_space<vmem>>, vector<2x8x16xf32>
    tpu.vector_store %arg6[%c0_17, %c0_18, %c0_19], %25 {strides = array<i32>} : memref<2x8x16xf32, #tpu.memory_space<vmem>>, vector<2x8x16xf32>,
    %c3_i32 = arith.constant 3 : i32
    %27 = arith.cmpi eq, %arg1, %c3_i32 : i32
    %28 = arith.extui %27 : i1 to i32
    %c0_i32_20 = arith.constant 0 : i32
    %29 = arith.cmpi ne, %28, %c0_i32_20 : i32
    scf.if %29 {
      %c0_21 = arith.constant 0 : index
      %c0_22 = arith.constant 0 : index
      %c0_23 = arith.constant 0 : index
      %30 = vector.load %arg6[%c0_21, %c0_22, %c0_23] : memref<2x8x16xf32, #tpu.memory_space<vmem>>, vector<2x8x16xf32>
      %c0_24 = arith.constant 0 : index
      %c0_25 = arith.constant 0 : index
      %c0_26 = arith.constant 0 : index
      %31 = vector.load %arg5[%c0_24, %c0_25, %c0_26] : memref<2x8x16xf32, #tpu.memory_space<vmem>>, vector<2x8x16xf32>
      tpu.vector_store %arg5[%c0_24, %c0_25, %c0_26], %30 {strides = array<i32>} : memref<2x8x16xf32, #tpu.memory_space<vmem>>, vector<2x8x16xf32>,
    } else {
    }
    return
  }
  func.func @transform_0(%arg0: i32, %arg1: i32) -> (i32, i32, i32) {
    %c0_i32 = arith.constant 0 : i32
    %c0_i32_0 = arith.constant 0 : i32
    %c0_i32_1 = arith.constant 0 : i32
    return %arg0, %c0_i32, %c0_i32_0 : i32, i32, i32
  }
  func.func @transform_1(%arg0: i32, %arg1: i32) -> (i32, i32, i32) {
    %c0_i32 = arith.constant 0 : i32
    %c0_i32_0 = arith.constant 0 : i32
    return %arg0, %arg1, %c0_i32 : i32, i32, i32
  }
  func.func @transform_2(%arg0: i32, %arg1: i32) -> (i32, i32, i32) {
    %c0_i32 = arith.constant 0 : i32
    %c0_i32_0 = arith.constant 0 : i32
    return %arg0, %arg1, %c0_i32 : i32, i32, i32
  }
  func.func @transform_3(%arg0: i32, %arg1: i32) -> (i32, i32, i32) {
    %c0_i32 = arith.constant 0 : i32
    %c0_i32_0 = arith.constant 0 : i32
    %c0_i32_1 = arith.constant 0 : i32
    return %arg0, %c0_i32, %c0_i32_0 : i32, i32, i32
  }
}

</mosaic_0001>

<bundles_post_ra>
// kernel: tpu_custom_call.1
= control target key start
LH: loop header
LB: loop body
LE: loop exit
PB: predicated region body
PF: predicated region fallthrough
CT: control target
= control target key end

     0   :  { %s1387_s0 = inlined_call_operand.vmem [shape: f32[4,8,16], index: 0, kind: input, shape index: {}]   ;;  %s1388_s1 = inlined_call_operand.vmem [shape: f32[4,64,16], index: 1, kind: input, shape index: {}]   ;;  %s1389_s2 = inlined_call_operand.vmem [shape: f32[4,64,16], index: 2, kind: input, shape index: {}]   ;;  %s1390_s3 = inlined_call_operand.hbm [shape: f32[4,8,16], index: 3, kind: output, shape index: {}]  }
   0x1   :  { %1391 = sst [smem:[#allocation8_spill]] %s1388_s1 }
   0x2   :  { %8 = vsyncpa [#allocation6], 0 }
   0x3   :  { %10 = vsyncpa [#allocation6 + $0x1], 0  ;;  %s1175_s12 = smov 0   ;;  %s1177_s13 = smov 0  }
   0x4   :  { %s1179_s14 = smov 0   ;;  %s1181_s15 = smov 0  }
   0x5   :  { %s1183_s16 = smov 0   ;;  %s1185_s17 = smov 0  }
   0x6   :  { %s1187_s18 = smov 0   ;;  %s1189_s19 = smov 0  }
   0x7   :  { %s1191_s20 = smov 0   ;;  %s1193_s21 = smov 0  }
   0x8 LB: > { %s843_s22 = sadd.s32 4294967295, %s1146_s21   ;;  %s844_s23 = sadd.s32 4294967294, %s1146_s21   ;;  %s1146_s21 = sphi %s1193_s21, %s16_s21   ;;  %s1142_s20 = sphi %s1191_s20, %s1404_s20   ;;  %s1138_s19 = sphi %s1189_s19, %s1403_s19   ;;  %s1134_s18 = sphi %s1187_s18, %s1402_s18   ;;  %s1130_s17 = sphi %s1185_s17, %s1401_s17   ;;  %s1126_s16 = sphi %s1183_s16, %s1400_s16   ;;  %s1122_s15 = sphi %s1181_s15, %s1399_s15   ;;  %s1118_s14 = sphi %s1179_s14, %s1398_s14   ;;  %s1114_s13 = sphi %s1177_s13, %s1397_s13   ;;  %s1110_s12 = sphi %s1175_s12, %s1396_s12  }
   0x9   : > { %s25_s24 = sadd.s32 1, %s1138_s19  ;;  %s28_s25 = sadd.s32 1, %s1142_s20 }
   0xa   : > { %p26_p0 = scmp.ge.s32.totalorder %s25_s24, 4  ;;  %s63_s26 = sadd.s32 1, %s1126_s16 }
   0xb   : > { %p70_p1 = scmp.ne.s32.totalorder %s1126_s16, %s1122_s15  ;;  %p71_p2 = scmp.eq.s32.totalorder %s1146_s21, 0 }
   0xc   : > { %s1406_s24 = smov (%p26_p0, %s25_s24), 0  ;;  %s1408_s25 = smov (!%p26_p0, %s28_s25), %s1142_s20 }
   0xd   : > { %s59_s27 = ssub.s32 %s1138_s19, %s1406_s24  ;;  %p1238_p3 = por %p71_p2, %p70_p1 }
   0xe   : > { %p30_p4 = scmp.ge.s32.totalorder %s1408_s25, 2  ;;  %s117_s29 = sadd.s32 1, %s1118_s14 }
   0xf   : > { %p127_p5 = scmp.ne.s32.totalorder %s1118_s14, %s1114_s13  ;;  %p128_p6 = scmp.eq.s32.totalorder %s843_s22, 7 }
  0x10   : > { %s1410_s25 = smov (%p30_p4, %s1408_s25), 0  ;;  %p133_p8 = scmp.ne.s32.totalorder %s1114_s13, %s1110_s12 }
  0x11   : > { %p1247_p7 = por %p128_p6, %p127_p5  ;;  %s58_s4 = ssub.s32 %s1142_s20, %s1410_s25 }
  0x12   : > { %p134_p9 = scmp.eq.s32.totalorder %s844_s23, 7  ;;  %s60_s5 = sor.u32 %s59_s27, %s58_s4 }
  0x13   : > { %p115_p10 = scmp.eq.s32.totalorder %s58_s4, 0  ;;  %p61_p11 = scmp.eq.s32.totalorder %s60_s5, 0 }
  0x14   : > { %p1255_p12 = por %p134_p9, %p133_p8  ;;  %p846_p13 = scmp.ge.s32.totalorder %s1146_s21, 8 }
  0x15   : > { %s1260_s7 = scalar_select %p115_p10, %s1118_s14, %s117_s29  }
  0x16   : > { %s1263_s8 = scalar_select %p61_p11, %s1126_s16, %s63_s26  }
  0x17   : > { %150 = sbr.rel (%p846_p13) target bundleno = 51 (0x33), region = 16 }
  0x1e   : > { %162 = sbr.rel (!%p1238_p3) target bundleno = 42 (0x2a), region = 24  ;;  %s164_s9 = sand.u32 (%p1238_p3), 1, %s1126_s16  }
  0x1f   : > { %s849_s10 = sshll.u32 (%p1238_p3), %s1138_s19, 1  ;;  %s847_s11 = sshll.u32 (%p1238_p3), %s164_s9, 5 }
  0x20   : > { %s878_s22 = sshll.u32 (%p1238_p3), %s1142_s20, 4  ;;  %s1395_s1 = sld [smem:[#allocation8_spill]] (%p1238_p3) }
  0x21   : > { %s170_s23 = sadd.s32 (%p1238_p3), %s878_s22, %s849_s10  ;;  %s166_s5 = scalar_lea.vmem (%p1238_p3), [#allocation3], %s847_s11 }
  0x22   : > { %s851_s27 = sshll.u32 (%p1238_p3), %s170_s23, 3 }
  0x26   : > { %s172_s26 = scalar_lea.vmem %s1395_s1, %s851_s27 }
  0x27   : > { %v206_v0 = vld [vmem:[%s172_s26] sm:$0xff]  ;;  %v208_v1 = vld [vmem:[%s172_s26 + $0x8] sm:$0xff] }
  0x28   : > { %v210_v2 = vld [vmem:[%s172_s26 + $0x40] sm:$0xff]  ;;  %207 = vst [vmem:[%s166_s5] sm:$0xff] %v206_v0  ;;  %209 = vst [vmem:[%s166_s5 + $0x8] sm:$0xff] %v208_v1  ;;  %v212_v3 = vld [vmem:[%s172_s26 + $0x48] sm:$0xff] }
  0x29   : > { %211 = vst [vmem:[%s166_s5 + $0x10] sm:$0xff] %v210_v2  ;;  %213 = vst [vmem:[%s166_s5 + $0x18] sm:$0xff] %v212_v3 }
  0x2a PF: > { %219 = sbr.rel (!%p1238_p3) target bundleno = 51 (0x33), region = 62  ;;  %s221_s9 = sand.u32 (%p1238_p3), 1, %s1126_s16  }
  0x2b   : > { %s854_s10 = sshll.u32 (%p1238_p3), %s1138_s19, 1  ;;  %s852_s22 = sshll.u32 (%p1238_p3), %s221_s9, 5 }
  0x2c   : > { %s879_s23 = sshll.u32 (%p1238_p3), %s1142_s20, 4  ;;  %s223_s26 = scalar_lea.vmem (%p1238_p3), [#allocation4], %s852_s22 }
  0x2d   : > { %s227_s27 = sadd.s32 (%p1238_p3), %s879_s23, %s854_s10 }
  0x2e   : > { %s856_s4 = sshll.u32 (%p1238_p3), %s227_s27, 3 }
  0x2f   : > { %s229_s1 = scalar_lea.vmem (%p1238_p3), %s1389_s2, %s856_s4 }
  0x30   : > { %v263_v4 = vld [vmem:[%s229_s1] sm:$0xff] (%p1238_p3)  ;;  %v265_v5 = vld [vmem:[%s229_s1 + $0x8] sm:$0xff] (%p1238_p3) }
  0x31   : > { %v267_v6 = vld [vmem:[%s229_s1 + $0x40] sm:$0xff]  ;;  %264 = vst [vmem:[%s223_s26] sm:$0xff] %v263_v4  ;;  %266 = vst [vmem:[%s223_s26 + $0x8] sm:$0xff] %v265_v5  ;;  %v269_v7 = vld [vmem:[%s229_s1 + $0x48] sm:$0xff] }
  0x32   : > { %268 = vst [vmem:[%s223_s26 + $0x10] sm:$0xff] %v267_v6  ;;  %270 = vst [vmem:[%s223_s26 + $0x18] sm:$0xff] %v269_v7 }
  0x33 PF: > { %p857_p0 = scmp.ge.s32.totalorder %s1146_s21, 1  ;;  %p275_p1 = scmp.lt.s32.totalorder %s1146_s21, 9 }
  0x35   : > { %p276_p2 = pnand %p857_p0, %p275_p1 }
  0x36   : > { %s282_s28 = sand.u32 (!%p276_p2), 1, %s1122_s15   ;;  %s318_s5 = sand.u32 (!%p276_p2), 1, %s1114_s13  }
  0x37   : > { %279 = sbr.rel (%p276_p2) target bundleno = 600 (0x258), region = 100  ;;  %s858_s9 = sshll.u32 (!%p276_p2), %s282_s28, 5 }
  0x38   : > { %s860_s10 = sshll.u32 (!%p276_p2), %s318_s5, 4  ;;  %s861_s22 = sshll.u32 (!%p276_p2), %s1134_s18, 1 }
  0x39   : > { %p322_p3 = scmp.lt.s32.totalorder (!%p276_p2), %s861_s22, 3  ;;  %s284_s29 = scalar_lea.vmem (!%p276_p2), [#allocation3], %s858_s9 }
  0x3a   : > { %s1292_s11 = scalar_lea.vmem (!%p276_p2), [#allocation4], %s858_s9  ;;  %s1294_s26 = scalar_lea.vmem (!%p276_p2), [#allocation5], %s860_s10 }
  0x3b   : > { %p863_p4 = scmp.ne.s32.totalorder (!%p276_p2), %s1130_s17, 0 }
  0x3e   : > { %s1412_s22 = smov (!%p322_p3, %s861_s22), 3  ;;  %335 = sbr.rel (%p863_p4) target bundleno = 69 (0x45), region = 112 }
  0x3f   : > { %s862_s1 = sshll.u32 %s1412_s22, 3  ;;  %vm336_vm0 = vcmask (!%p863_p4), 130048   ;;  %v1148_v8 = vmov (!%p863_p4), 0.0  }
  0x40   : > { %s325_s4 = scalar_lea.vmem %s1387_s0, %s862_s1  ;;  %337 = vst.msk [vmem:[#allocation2] sm:$0xff] (!%p863_p4), %vm336_vm0, %v1148_v8  ;;  %338 = vst.msk [vmem:[#allocation2 + $0x8] sm:$0xff] (!%p863_p4), %vm336_vm0, %v1148_v8 }
  0x45 PF: > { %v343_v9 = vld [vmem:[%s284_s29] sm:$0xff]  ;;  %v344_v10 = vld [vmem:[%s284_s29 + $0x8] sm:$0xff]  ;;  %vm351_vm1 = vcmask 130048   ;;  %v345_v11 = vld [vmem:[%s284_s29 + $0x10] sm:$0xff]  ;;  %v1149_v12 = vmov 0.0|0.0   ;;  %vm1150_vm3 = vmmov 0  }
  0x46   : > { %921 = vmatprep.subr.bf16.mxu0 %v1149_v12  ;;  %925 = vmatprep.subr.bf16.mxu1 %v1149_v12  ;;  %v922_v13 = vpack.c.bf16 %v344_v10, %v343_v9  ;;  %vm923_vm2 = vmpackc.low %vm351_vm1, %vm351_vm1  ;;  %v346_v14 = vld [vmem:[%s284_s29 + $0x18] sm:$0xff]  ;;  %v1151_v16 = vmov 0.0   ;;  %v339_v17 = vld [vmem:[%s325_s4] sm:$0xff]  ;;  %p872_p5 = scmp.ne.s32.totalorder %s1130_s17, 3 }
  0x47   : > { %v926_v15 = vpack.c.bf16 %v346_v14, %v345_v11  ;;  %897 = vmatprep.mubr.msk.f32.mxu0 %vm1150_vm3, %v1151_v16  ;;  %904 = vmatprep.mubr.msk.f32.mxu1 %vm1150_vm3, %v1151_v16  ;;  %v340_v18 = vld [vmem:[%s325_s4 + $0x8] sm:$0xff]  ;;  %v341_v19 = vmul.f32 0.25, %v339_v17  ;;  %v347_v21 = vld [vmem:[%s1292_s11] sm:$0xff]  ;;  %v348_v22 = vld [vmem:[%s1292_s11 + $0x8] sm:$0xff] }
  0x48   : > { %924 = vmatpush3.bf16.xpose.msk.msra.mxu0 %vm923_vm2, %v922_v13  ;;  %v342_v20 = vmul.f32 0.25, %v340_v18  ;;  %v349_v23 = vld [vmem:[%s1292_s11 + $0x10] sm:$0xff]  ;;  %v930_v24 = vpack.c.bf16 %v348_v22, %v347_v21  ;;  %v350_v25 = vld [vmem:[%s1292_s11 + $0x18] sm:$0xff] }
  0x49   : > { %928 = vmatpush3.bf16.xpose.msk.msra.mxu1 %vm923_vm2, %v926_v15  ;;  %929 = vmatprep.subr.bf16.mxu0 %v1149_v12  ;;  %v933_v26 = vpack.c.bf16 %v350_v25, %v349_v23  ;;  %v554_v11 = vld [vmem:[#allocation2] sm:$0xff] }
  0x4a   : > { %932 = vmatprep.subr.bf16.mxu1 %v1149_v12  ;;  %v555_v12 = vld [vmem:[#allocation2 + $0x8] sm:$0xff] }
  0x4f   : > { %898 = vmatmul.mubr.msk.f32.vlgmr.msra.gmra.mrb[0].mxu0 %vm351_vm1, %v341_v19 }
  0x50   : > { %905 = vmatmul.mubr.msk.f32.vlgmr.msra.gmra.mrb[0].mxu1 %vm351_vm1, %v342_v20  ;;  %911 = vmatprep.mubr.msk.f32.mxu0 %vm1150_vm3, %v1151_v16 }
  0x51   : > { %918 = vmatprep.mubr.msk.f32.mxu1 %vm1150_vm3, %v1151_v16  ;;  %931 = vmatpush3.bf16.msra.mxu0 %v930_v24 }
  0x52   : > { %934 = vmatpush3.bf16.msra.mxu1 %v933_v26 }
 0x122   : > { %v427_v27 = vpop.f32.mrb[0].mxu0 }
 0x123   : > { %v510_v28 = vsel %vm351_vm1, %v427_v27, -inf  ;;  %v506_v29 = vpop.f32.mrb[0].mxu1  ;;  %v899_v30 = vpop.f32.mrb[1].mxu0 }
 0x124   : > { %v511_v31 = vrot.slane %v510_v28, 4  ;;  %v517_v32 = vsel %vm351_vm1, %v506_v29, -inf  ;;  %v906_v33 = vpop.f32.mrb[1].mxu1 }
 0x125   : > { %v518_v34 = vrot.slane %v517_v32, 4 }
 0x126   : > { %v512_v35 = vmax.f32 %v510_v28, %v511_v31 }
 0x127   : > { %v519_v36 = vmax.f32 %v517_v32, %v518_v34 }
 0x128   : > { %v513_v37 = vrot.slane %v512_v35, 2 }
 0x129   : > { %v520_v38 = vrot.slane %v519_v36, 2 }
 0x12a   : > { %v514_v39 = vmax.f32 %v512_v35, %v513_v37 }
 0x12b   : > { %v521_v40 = vmax.f32 %v519_v36, %v520_v38 }
 0x12c   : > { %v515_v41 = vrot.slane %v514_v39, 1 }
 0x12d   : > { %v522_v42 = vrot.slane %v521_v40, 1 }
 0x12e   : > { %v516_v43 = vmax.f32 %v514_v39, %v515_v41 }
 0x12f   : > { %v523_v44 = vmax.f32 %v521_v40, %v522_v42 }
 0x130   : > { %v524_v45 = vsub.f32 %v427_v27, %v516_v43 }
 0x131   : > { %v525_v46 = vsub.f32 %v506_v29, %v523_v44 }
 0x132   : > { %v526_v47 = vmul.f32 1.442695, %v524_v45 }
 0x133   : > { %v528_v48 = vmul.f32 1.442695, %v525_v46 }
 0x134   : > { %1028 = vpow2.f32 %v526_v47 }
 0x135   : > { %1030 = vpow2.f32 %v528_v48 }
 0x13e   : > { %v1029_v49 = vpop.eup %1028 }
 0x13f   : > { %v1031_v50 = vpop.eup %1030  ;;  %v530_v51 = vsel %vm351_vm1, %v1029_v49, 0.0 }
 0x140   : > { %v531_v52 = vrot.slane %v530_v51, 4  ;;  %v537_v53 = vsel %vm351_vm1, %v1031_v50, 0.0 }
 0x141   : > { %v538_v54 = vrot.slane %v537_v53, 4 }
 0x142   : > { %v532_v55 = vadd.f32 %v531_v52, %v530_v51 }
 0x143   : > { %v539_v56 = vadd.f32 %v538_v54, %v537_v53 }
 0x144   : > { %v533_v57 = vrot.slane %v532_v55, 2 }
 0x145   : > { %v540_v58 = vrot.slane %v539_v56, 2 }
 0x146   : > { %v534_v59 = vadd.f32 %v533_v57, %v532_v55 }
 0x147   : > { %v541_v60 = vadd.f32 %v540_v58, %v539_v56 }
 0x148   : > { %v535_v61 = vrot.slane %v534_v59, 1 }
 0x149   : > { %v542_v62 = vrot.slane %v541_v60, 1 }
 0x14a   : > { %v536_v63 = vadd.f32 %v535_v61, %v534_v59 }
 0x14b   : > { %v543_v0 = vadd.f32 %v542_v62, %v541_v60 }
 0x14c   : > { %1032 = vrcp.f32 %v536_v63 }
 0x14d   : > { %1034 = vrcp.f32 %v543_v0 }
 0x156   : > { %v1033_v1 = vpop.eup %1032 }
 0x157   : > { %v1035_v2 = vpop.eup %1034  ;;  %v546_v3 = vmul.f32 %v1033_v1, %v536_v63 }
 0x158   : > { %v547_v4 = vmul.f32 %v1035_v2, %v543_v0 }
 0x159   : > { %v548_v5 = vsub.f32 2.0, %v546_v3 }
 0x15a   : > { %v549_v6 = vsub.f32 2.0, %v547_v4 }
 0x15b   : > { %v550_v7 = vmul.f32 %v1033_v1, %v548_v5 }
 0x15c   : > { %v551_v8 = vmul.f32 %v1035_v2, %v549_v6 }
 0x15d   : > { %v552_v9 = vmul.f32 %v1029_v49, %v550_v7 }
 0x15e   : > { %v553_v10 = vmul.f32 %v1031_v50, %v551_v8 }
 0x15f   : > { %912 = vmatmul.mubr.msk.f32.vlgmr.msra.gmra.mrb[2].mxu0 %vm351_vm1, %v552_v9 }
 0x160   : > { %919 = vmatmul.mubr.msk.f32.vlgmr.msra.gmra.mrb[2].mxu1 %vm351_vm1, %v553_v10 }
 0x230   : > { %709 = sbr.rel (%p872_p5) target bundleno = 575 (0x23f), region = 116 }
 0x232   : > { %v625_v13 = vpop.f32.mrb[2].mxu0 }
 0x233   : > { %v702_v14 = vadd.f32 %v625_v13, %v554_v11  ;;  %v698_v15 = vpop.f32.mrb[2].mxu1  ;;  %v913_v16 = vpop.f32.mrb[3].mxu0 }
 0x234   : > { %v703_v17 = vadd.f32 %v698_v15, %v555_v12  ;;  %v920_v18 = vpop.f32.mrb[3].mxu1 }
 0x235   : > { %704 = vst.msk [vmem:[#allocation2] sm:$0xff] %vm351_vm1, %v702_v14 }
 0x236   : > { %705 = vst.msk [vmem:[#allocation2 + $0x8] sm:$0xff] %vm351_vm1, %v703_v17 }
 0x23c   : > { %v710_v19 = vld [vmem:[#allocation2] sm:$0xff] }
 0x23d   : > { %v711_v20 = vld [vmem:[#allocation2 + $0x8] sm:$0xff]  ;;  %712 = vst.msk [vmem:[%s1294_s26] sm:$0xff] %vm351_vm1, %v710_v19 }
 0x23e   : > { %713 = vst.msk [vmem:[%s1294_s26 + $0x8] sm:$0xff] %vm351_vm1, %v711_v20 }
 0x23f PF: > { %s880_s15 = sshll.u32 %s1134_s18, 8  ;;  %s728_s17 = sshll.u32 %s1294_s26, 4  ;;  %s1325_s17 = int_to_ptr.vmem [resolvable:$true] %s728_s17 }
 0x240   : > { %s1322_s10 = scalar_lea.hbm %s1390_s3, %s880_s15  ;;  %s1329_s22 = scalar_lea.sflag [#allocation6], %s318_s5 }
 0x241   : > { %s1036_s1 = scalar_lea.vmem %s1325_s17, 256  ;;  %s1152_s18 = smov [#allocation5]  }
 0x242   : > { %p1037_p6 = scmp.ne.s32.totalorder %s1325_s17, %s1036_s1  ;;  %s1040_s23 = sshll.u32 %s1152_s18, 4  ;;  %s1041_s23 = int_to_ptr.vmem [resolvable:$false] %s1040_s23 }
 0x243   : > { %s1042_s27 = scalar_lea.vmem %s1041_s23, 512  ;;  %p1043_p10 = scmp.lt.s32.totalorder %s1325_s17, %s1041_s23 }
 0x244   : > { %p1038_p8 = pnand %p1037_p6, %p1247_p7  ;;  %p1044_p11 = scmp.lt.s32.totalorder %s1042_s27, %s1036_s1 }
 0x246   : > { %p1039_p9 = pneg %p1038_p8  ;;  %p1045_p13 = por %p1044_p11, %p1043_p10 }
 0x248   : > { %p1046_p0 = pnand %p1045_p13, %p1039_p9 }
 0x24a   : > { %1049 = shalt.err (!%p1046_p0)
}
 0x24b   : > { %s1050_s5 = scalar_lea.hbm %s1322_s10, 256  ;;  %s1054_s11 = scalar_lea.hbm %s1390_s3, 512 }
 0x24c   : > { %p1051_p1 = scmp.ne.s32.totalorder %s1322_s10, %s1050_s5  ;;  %p1055_p4 = scmp.lt.u32.totalorder %s1322_s10, %s1390_s3 }
 0x24d   : > { %p1056_p5 = scmp.lt.u32.totalorder %s1054_s11, %s1050_s5  ;;  %p1058_p8 = scmp.lt.u32.totalorder %s1050_s5, %s1322_s10 }
 0x24e   : > { %p1052_p2 = pnand %p1051_p1, %p1247_p7 }
 0x24f   : > { %p1057_p6 = por %p1056_p5, %p1055_p4 }
 0x250   : > { %p1053_p3 = pneg %p1052_p2 }
 0x251   : > { %p1059_p9 = por %p1058_p8, %p1057_p6 }
 0x253   : > { %p1060_p10 = pnand %p1059_p9, %p1053_p3 }
 0x255   : > { %1063 = shalt.err (!%p1060_p10)
}
 0x256   : > { %s1153_s28 = smov 128   ;;  %s1154_s9 = smov 8  }
 0x257   : > { %935 = dma.vmem_to_hbm [thread:$0]  (%p1247_p7), %s1325_s17, 256, %s1322_s10, %s1329_s22, %s1153_s28, %s1153_s28, %s1154_s9  }
 0x258 PF: > { %p941_p11 = scmp.ge.s32.totalorder %s1146_s21, 2  ;;  %s743_s1 = sand.u32 1, %s1110_s12  }
 0x259   : > { %s744_s18 = scalar_lea.sflag [#allocation6], %s743_s1 }
 0x25a   : > { %p938_p13 = pnand %p941_p11, %p1255_p12 }
 0x25c   : > { %1105 = dma.done.wait (!%p938_p13), %s744_s18, 256  }
 0x25d   : > { %1107 = vsyncadd (!%p938_p13), %s744_s18, 4294967040  ;;  %s16_s21 = sadd.s32 1, %s1146_s21   ;;  %s1396_s12 = smov %s1114_s13 }
 0x25e   : > { %p13_p0 = scmp.ge.s32.totalorder %s16_s21, 10   ;;  %s1397_s13 = smov %s1118_s14 }
 0x25f   : > { %s1398_s14 = smov %s1260_s7  ;;  %s1399_s15 = smov %s1126_s16 }
 0x260   : > { %s1400_s16 = smov %s1263_s8  ;;  %s1401_s17 = smov %s1138_s19 }
 0x261   : > { %s1402_s18 = smov %s1142_s20  ;;  %s1403_s19 = smov %s1406_s24 }
 0x262   : > { %s1404_s20 = smov %s1410_s25  ;;  %15 = sbr.rel (!%p13_p0) target bundleno = 8 (0x8), region = 167 }
 0x269   :  { %749 = vsyncpa [#allocation6], 1 }
 0x26a   :  { %751 = vsyncpa [#allocation6 + $0x1], 1 }

</bundles_post_ra>
